<compile_context>
chip_gen: v7x
topology: tpu7x:2x2x1
jax: 0.10.0
libtpu: 0.0.40
codegen_flags: <defaults>
</compile_context>

<pallas_src>
import functools

import jax
import jax.numpy as jnp
from jax.experimental import pallas as pl
from jax.experimental.pallas import tpu as pltpu


def _cur_mse_kernel(out_ref, conv_ref, w_ref, loss_ref, *, inv_denom):
    # out_ref/conv_ref/w_ref: VMEM tiles holding the D=3 slab for a group of
    # (b, c) rows (either (nbc, H*W) lane-dense or (nbc, H, W) fallback).
    # loss_ref: (1, 1) f32 SMEM output, resident across the whole grid and
    # used directly as the running accumulator.
    i = pl.program_id(0)

    @pl.when(i == 0)
    def _():
        loss_ref[0, 0] = jnp.float32(0.0)

    diff = conv_ref[...].astype(jnp.float32) - out_ref[...].astype(jnp.float32)
    partial = jnp.sum(w_ref[...].astype(jnp.float32) * diff * diff)
    loss_ref[0, 0] += partial

    @pl.when(i == pl.num_programs(0) - 1)
    def _():
        # Fused divide-by-(B*C*1024) in the epilogue.
        loss_ref[0, 0] = loss_ref[0, 0] * jnp.float32(inv_denom)


def cur_mse(output, convdata, visweight):
    """JAX/Pallas equivalent of CurMSE.forward (verbose=False path)."""
    B, C, D, H, W = convdata.shape
    BC = B * C
    HW = H * W

    inv_denom = 1.0 / (B * C * 1024.0)
    kernel = functools.partial(_cur_mse_kernel, inv_denom=inv_denom)

    # Target up to ~4 MiB of f32 per input per block; with double-buffering of
    # 3 inputs that is <= ~24 MiB, comfortably inside the 32 MiB VMEM limit we
    # request below (valid on v5e/v6e/v7x).
    cap_bytes = 4 * 1024 * 1024

    # --- Path 1: lane-dense 2-D layout (preferred) -------------------------
    # Arrays reshaped (free, contiguous) to (BC, D*H*W); the D=3 slab is block
    # index 3 along the last dim. Block shape (nbc, HW) requires:
    #   * HW % 128 == 0 (or HW == D*HW, i.e. D == 1)
    #   * nbc % 8 == 0 or nbc == BC
    use_2d = (HW % 128 == 0) or (D == 1)
    nbc = None
    if use_2d:
        for d in range(1, BC + 1):
            if BC % d == 0 and (d % 8 == 0 or d == BC) and d * HW * 4 <= cap_bytes:
                nbc = d
        use_2d = nbc is not None

    if use_2d:
        out_r = output.reshape(BC, D * HW)
        conv_r = convdata.reshape(BC, D * HW)
        w_r = visweight.reshape(BC, HW)
        sliced_spec = pl.BlockSpec((nbc, HW), lambda i: (i, 3))
        w_spec = pl.BlockSpec((nbc, HW), lambda i: (i, 0))
    else:
        # --- Path 2: 4-D fallback (always legal: trailing dims = full (H, W)).
        # Account for lane padding (W padded to a multiple of 128 in VMEM).
        w_pad = ((W + 127) // 128) * 128
        row_bytes = H * w_pad * 4
        nbc = 1
        for d in range(1, BC + 1):
            if BC % d == 0 and d * row_bytes <= cap_bytes:
                nbc = d
        out_r = output.reshape(BC, D, H, W)
        conv_r = convdata.reshape(BC, D, H, W)
        w_r = visweight.reshape(BC, H, W)
        sliced_spec = pl.BlockSpec(
            (nbc, pl.Squeezed(), H, W), lambda i: (i, 3, 0, 0)
        )
        w_spec = pl.BlockSpec((nbc, H, W), lambda i: (i, 0, 0))

    grid = (BC // nbc,)

    loss = pl.pallas_call(
        kernel,
        out_shape=jax.ShapeDtypeStruct((1, 1), jnp.float32),
        grid_spec=pltpu.PrefetchScalarGridSpec(
            num_scalar_prefetch=0,
            grid=grid,
            in_specs=[sliced_spec, sliced_spec, w_spec],
            out_specs=pl.BlockSpec(memory_space=pltpu.MemorySpace.SMEM),
        ),
        compiler_params=pltpu.CompilerParams(
            dimension_semantics=("arbitrary",),  # output accumulated across axis
            vmem_limit_bytes=32 * 1024 * 1024,
        ),
    )(out_r, conv_r, w_r)

    return loss[0, 0]


def _reference(output, convdata, visweight):
    e2 = jnp.square(
        convdata[:, :, 3, :, :].astype(jnp.float32)
        - output[:, :, 3, :, :].astype(jnp.float32)
    ).reshape(-1)
    w = visweight.astype(jnp.float32).reshape(-1)
    return jnp.sum(w * e2) / (convdata.shape[0] * convdata.shape[1] * 1024.0)


if __name__ == "__main__":
    key = jax.random.PRNGKey(0)
    k1, k2, k3 = jax.random.split(key, 3)

    B, C, D, H, W = 2, 4, 4, 16, 16  # D >= 4 so index 3 along dim 2 is valid
    output = jax.random.normal(k1, (B, C, D, H, W), dtype=jnp.float32)
    convdata = jax.random.normal(k2, (B, C, D, H, W), dtype=jnp.float32)
    # visweight values akin to the module's 10 / 0.1 mask weights
    visweight = jnp.where(
        jax.random.uniform(k3, (B, C, H, W)) > 0.5, 10.0, 0.1
    ).astype(jnp.float32)

    loss = cur_mse(output, convdata, visweight)
    jax.block_until_ready(loss)

    ref = _reference(output, convdata, visweight)
    assert jnp.allclose(loss, ref, rtol=1e-5, atol=1e-5), (loss, ref)
    print("KERNEL_OK")
</pallas_src>

<mosaic_0001>
module attributes {stable_mosaic.version = 11 : i64} {
  func.func @_cur_mse_kernel(%arg0: i32, %arg1: memref<8x256xf32, #tpu.memory_space<vmem>>, %arg2: memref<8x256xf32, #tpu.memory_space<vmem>>, %arg3: memref<8x256xf32, #tpu.memory_space<vmem>>, %arg4: memref<1x1xf32, #tpu.memory_space<smem>>) attributes {dimension_semantics = [#tpu.dimension_semantics<arbitrary>], iteration_bounds = array<i64: 1>, scalar_prefetch = 0 : i64, scratch_operands = 0 : i64, tpu.core_type = #tpu.core_type<tc>, window_params = [{transform_indices = @transform_0, window_bounds = array<i64: 8, 256>}, {transform_indices = @transform_1, window_bounds = array<i64: 8, 256>}, {transform_indices = @transform_2, window_bounds = array<i64: 8, 256>}, {transform_indices = @transform_3, window_bounds = array<i64: 1, 1>}]} {
    %c0_i32 = arith.constant 0 : i32
    %0 = arith.cmpi eq, %arg0, %c0_i32 : i32
    %1 = arith.extui %0 : i1 to i32
    %c0_i32_0 = arith.constant 0 : i32
    %2 = arith.cmpi ne, %1, %c0_i32_0 : i32
    scf.if %2 {
      %cst_12 = arith.constant 0.000000e+00 : f32
      %c0_13 = arith.constant 0 : index
      %c0_14 = arith.constant 0 : index
      %19 = memref.load %arg4[%c0_13, %c0_14] : memref<1x1xf32, #tpu.memory_space<smem>>
      memref.store %cst_12, %arg4[%c0_13, %c0_14] : memref<1x1xf32, #tpu.memory_space<smem>>
    } else {
    }
    %c0 = arith.constant 0 : index
    %c0_1 = arith.constant 0 : index
    %3 = vector.load %arg2[%c0, %c0_1] : memref<8x256xf32, #tpu.memory_space<vmem>>, vector<8x256xf32>
    %c0_2 = arith.constant 0 : index
    %c0_3 = arith.constant 0 : index
    %4 = vector.load %arg1[%c0_2, %c0_3] : memref<8x256xf32, #tpu.memory_space<vmem>>, vector<8x256xf32>
    %5 = arith.subf %3, %4 : vector<8x256xf32>
    %c0_4 = arith.constant 0 : index
    %c0_5 = arith.constant 0 : index
    %6 = vector.load %arg3[%c0_4, %c0_5] : memref<8x256xf32, #tpu.memory_space<vmem>>, vector<8x256xf32>
    %7 = arith.mulf %6, %5 : vector<8x256xf32>
    %8 = arith.mulf %7, %5 : vector<8x256xf32>
    %9 = vector.shape_cast %8 : vector<8x256xf32> to vector<1x8x256xf32>
    %cst = arith.constant dense<0.000000e+00> : vector<1xf32>
    %10 = vector.multi_reduction <add>, %9, %cst [1, 2] : vector<1x8x256xf32> to vector<1xf32>
    %11 = vector.shape_cast %10 : vector<1xf32> to vector<1x1x1xf32>
    %12 = vector.extract %11[0, 0, 0] : f32 from vector<1x1x1xf32>
    %c0_6 = arith.constant 0 : index
    %c0_7 = arith.constant 0 : index
    %13 = memref.load %arg4[%c0_6, %c0_7] : memref<1x1xf32, #tpu.memory_space<smem>>
    %14 = arith.addf %13, %12 : f32
    %c0_8 = arith.constant 0 : index
    %c0_9 = arith.constant 0 : index
    %15 = memref.load %arg4[%c0_8, %c0_9] : memref<1x1xf32, #tpu.memory_space<smem>>
    memref.store %14, %arg4[%c0_8, %c0_9] : memref<1x1xf32, #tpu.memory_space<smem>>
    %c0_i32_10 = arith.constant 0 : i32
    %16 = arith.cmpi eq, %arg0, %c0_i32_10 : i32
    %17 = arith.extui %16 : i1 to i32
    %c0_i32_11 = arith.constant 0 : i32
    %18 = arith.cmpi ne, %17, %c0_i32_11 : i32
    scf.if %18 {
      %c0_12 = arith.constant 0 : index
      %c0_13 = arith.constant 0 : index
      %19 = memref.load %arg4[%c0_12, %c0_13] : memref<1x1xf32, #tpu.memory_space<smem>>
      %cst_14 = arith.constant 1.22070313E-4 : f32
      %20 = arith.mulf %19, %cst_14 : f32
      %c0_15 = arith.constant 0 : index
      %c0_16 = arith.constant 0 : index
      %21 = memref.load %arg4[%c0_15, %c0_16] : memref<1x1xf32, #tpu.memory_space<smem>>
      memref.store %20, %arg4[%c0_15, %c0_16] : memref<1x1xf32, #tpu.memory_space<smem>>
    } else {
    }
    return
  }
  func.func @transform_0(%arg0: i32) -> (i32, i32) {
    %c3_i32 = arith.constant 3 : i32
    %c0_i32 = arith.constant 0 : i32
    return %arg0, %c3_i32 : i32, i32
  }
  func.func @transform_1(%arg0: i32) -> (i32, i32) {
    %c3_i32 = arith.constant 3 : i32
    %c0_i32 = arith.constant 0 : i32
    return %arg0, %c3_i32 : i32, i32
  }
  func.func @transform_2(%arg0: i32) -> (i32, i32) {
    %c0_i32 = arith.constant 0 : i32
    %c0_i32_0 = arith.constant 0 : i32
    return %arg0, %c0_i32 : i32, i32
  }
  func.func @transform_3(%arg0: i32) -> (i32, i32) {
    %c0_i32 = arith.constant 0 : i32
    %c0_i32_0 = arith.constant 0 : i32
    %c0_i32_1 = arith.constant 0 : i32
    return %c0_i32, %c0_i32_0 : i32, i32
  }
}

</mosaic_0001>

<bundles_post_ra>
// kernel: tpu_custom_call.1
= control target key start
LH: loop header
LB: loop body
LE: loop exit
PB: predicated region body
PF: predicated region fallthrough
CT: control target
= control target key end

     0   :  { %8 = vsyncpa [#allocation3], 0  ;;  %s272_s0 = inlined_call_operand.hbm [shape: f32[8,1024], index: 0, kind: input, shape index: {}]   ;;  %s273_s1 = inlined_call_operand.hbm [shape: f32[8,1024], index: 1, kind: input, shape index: {}]   ;;  %s274_s2 = inlined_call_operand.hbm [shape: f32[8,256], index: 2, kind: input, shape index: {}]   ;;  %s275_s3 = inlined_call_operand.hbm [shape: f32[1,1], index: 3, kind: output, shape index: {}]  }
   0x1   :  { %9 = vsyncpa [#allocation6], 0  ;;  %s27_s14 = scalar_lea.hbm %s273_s1, 768 }
   0x2   :  { %10 = vsyncpa [#allocation4], 0  ;;  %s200_s15 = smov [#allocation5]   ;;  %s230_s19 = scalar_lea.hbm %s272_s0, 768 }
   0x3   :  { %s29_s16 = sshll.u32 %s200_s15, 4  ;;  %s136_s22 = scalar_lea.hbm %s273_s1, 1024  ;;  %s30_s16 = int_to_ptr.vmem [resolvable:$true] %s29_s16 }
   0x4   :  { %p113_p0 = scmp.ne.s32.totalorder %s27_s14, %s136_s22  ;;  %p115_p1 = scmp.lt.u32.totalorder %s27_s14, %s273_s1 }
   0x5   :  { %p116_p2 = scmp.lt.u32.totalorder %s136_s22, %s136_s22  ;;  %p118_p4 = scmp.lt.u32.totalorder %s136_s22, %s27_s14 }
   0x7   :  { %p117_p3 = por %p116_p2, %p115_p1 }
   0x9   :  { %p119_p5 = por %p118_p4, %p117_p3 }
   0xb   :  { %p120_p6 = pnand %p119_p5, %p113_p0 }
   0xd   :  { %123 = shalt.err (!%p120_p6)
}
   0xe   :  { %s124_s25 = scalar_lea.vmem %s30_s16, 256  ;;  %p129_p8 = scmp.lt.s32.totalorder %s30_s16, %s30_s16 }
   0xf   :  { %p125_p7 = scmp.ne.s32.totalorder %s30_s16, %s124_s25  ;;  %p130_p9 = scmp.lt.s32.totalorder %s124_s25, %s124_s25 }
  0x11   :  { %p131_p10 = por %p130_p9, %p129_p8 }
  0x13   :  { %p132_p11 = pnand %p131_p10, %p125_p7 }
  0x15   :  { %135 = shalt.err (!%p132_p11)
}
  0x16   :  { %32 = dma.hbm_to_vmem [thread:$0]  %s27_s14, 256, %s30_s16, [#allocation6]  }
  0x17   :  { %s201_s26 = smov [#allocation2]   ;;  %s202_s1 = smov [#allocation7]  }
  0x18   :  { %s18_s27 = sshll.u32 %s201_s26, 4  ;;  %s39_s28 = sshll.u32 %s202_s1, 4  ;;  %s19_s27 = int_to_ptr.vmem [resolvable:$true] %s18_s27  ;;  %s40_s28 = int_to_ptr.vmem [resolvable:$true] %s39_s28 }
  0x19   :  { %s161_s4 = scalar_lea.hbm %s272_s0, 1024  ;;  %p140_p13 = scmp.lt.u32.totalorder %s230_s19, %s272_s0 }
  0x1a   :  { %p138_p12 = scmp.ne.s32.totalorder %s230_s19, %s161_s4  ;;  %p141_p0 = scmp.lt.u32.totalorder %s161_s4, %s161_s4 }
  0x1b   :  { %p143_p2 = scmp.lt.u32.totalorder %s161_s4, %s230_s19 }
  0x1c   :  { %p142_p1 = por %p141_p0, %p140_p13 }
  0x1e   :  { %p144_p3 = por %p143_p2, %p142_p1 }
  0x20   :  { %p145_p4 = pnand %p144_p3, %p138_p12 }
  0x22   :  { %148 = shalt.err (!%p145_p4)
}
  0x23   :  { %s149_s7 = scalar_lea.vmem %s19_s27, 256  ;;  %p154_p6 = scmp.lt.s32.totalorder %s19_s27, %s19_s27 }
  0x24   :  { %p150_p5 = scmp.ne.s32.totalorder %s19_s27, %s149_s7  ;;  %p155_p7 = scmp.lt.s32.totalorder %s149_s7, %s149_s7 }
  0x26   :  { %p156_p8 = por %p155_p7, %p154_p6 }
  0x28   :  { %p157_p9 = pnand %p156_p8, %p150_p5 }
  0x2a   :  { %160 = shalt.err (!%p157_p9)
}
  0x2b   :  { %21 = dma.hbm_to_vmem [thread:$0]  %s230_s19, 256, %s19_s27, [#allocation3]  }
  0x2c   :  { %s162_s0 = scalar_lea.hbm %s274_s2, 256 }
  0x2d   :  { %p163_p10 = scmp.ne.s32.totalorder %s274_s2, %s162_s0  ;;  %p166_p11 = scmp.lt.u32.totalorder %s162_s0, %s274_s2 }
  0x2f   :  { %p168_p12 = pnand %p166_p11, %p163_p10 }
  0x31   :  { %171 = shalt.err (!%p168_p12)
}
  0x32   :  { %s172_s14 = scalar_lea.vmem %s40_s28, 256  ;;  %p177_p0 = scmp.lt.s32.totalorder %s40_s28, %s40_s28 }
  0x33   :  { %p173_p13 = scmp.ne.s32.totalorder %s40_s28, %s172_s14  ;;  %p178_p1 = scmp.lt.s32.totalorder %s172_s14, %s172_s14 }
  0x35   :  { %p179_p2 = por %p178_p1, %p177_p0 }
  0x37   :  { %p180_p3 = pnand %p179_p2, %p173_p13 }
  0x39   :  { %183 = shalt.err (!%p180_p3)
}
  0x3a   :  { %42 = dma.hbm_to_vmem [thread:$0]  %s274_s2, 256, %s40_s28, [#allocation6]  }
  0x3b   :  { %194 = dma.done.wait [#allocation3], 256  }
  0x3c   :  { %195 = vsyncadd [#allocation3], 4294967040 }
  0x3d   :  { %196 = dma.done.wait [#allocation6], 512  }
  0x3e   :  { %197 = vsyncadd [#allocation6], 4294966784  ;;  %v58_v0 = vld [vmem:[#allocation5] sm:$0xff]  ;;  %v59_v1 = vld [vmem:[#allocation5 + $0x8] sm:$0xff]  ;;  %s184_s20 = scalar_lea.hbm %s275_s3, 16 }
  0x3f   :  { %v60_v2 = vld [vmem:[#allocation2] sm:$0xff]  ;;  %v61_v3 = vld [vmem:[#allocation2 + $0x8] sm:$0xff]  ;;  %p185_p4 = scmp.ne.s32.totalorder %s275_s3, %s184_s20  ;;  %p188_p5 = scmp.lt.u32.totalorder %s184_s20, %s275_s3 }
  0x40   :  { %v62_v4 = vsub.f32 %v58_v0, %v60_v2  ;;  %v64_v5 = vld [vmem:[#allocation7] sm:$0xff]  ;;  %v65_v6 = vld [vmem:[#allocation7 + $0x8] sm:$0xff]  ;;  %v63_v7 = vsub.f32 %v59_v1, %v61_v3 }
  0x41   :  { %p190_p6 = pnand %p188_p5, %p185_p4 }
  0x42   :  { %v66_v8 = vmul.f32 %v64_v5, %v62_v4  ;;  %v67_v9 = vmul.f32 %v65_v6, %v63_v7 }
  0x44   :  { %v68_v10 = vmul.f32 %v66_v8, %v62_v4  ;;  %v69_v11 = vmul.f32 %v67_v9, %v63_v7 }
  0x46   :  { %v70_v12 = vadd.f32 %v69_v11, %v68_v10 }
  0x48   :  { %71 = vadd.xlane.f32.xlu0 %v70_v12 }
  0xd5   :  { %v72_v13 = vpop.xlane.xlu0 %71 }
  0xd6   :  { %v73_v14 = vrot.slane %v72_v13, 4 }
  0xd8   :  { %v74_v15 = vadd.f32 %v73_v14, %v72_v13 }
  0xda   :  { %v75_v16 = vrot.slane %v74_v15, 2 }
  0xdc   :  { %v76_v17 = vadd.f32 %v75_v16, %v74_v15 }
  0xde   :  { %v77_v18 = vrot.slane %v76_v17, 1 }
  0xe0   :  { %v78_v19 = vadd.f32 %v77_v18, %v76_v17 }
  0xe2   :  { %105 = vpush %v78_v19 }
 0x113   :  { %s106_s2 = spop %105 }
 0x114   :  { %s88_s17 = smul.f32 0.00012207031, %s106_s2 }
 0x116   :  { %89 = sst [smem:[#allocation8]] %s88_s17 }
 0x117   :  { %193 = shalt.err (!%p190_p6)
}
 0x118   :  { %s203_s25 = smov [#allocation8]  }
 0x119   :  { %97 = dma.smem_to_hbm %s203_s25, 16, %s275_s3, [#allocation4]  }
 0x11a   :  { %198 = dma.done.wait [#allocation4], 16  }
 0x11b   :  { %199 = vsyncadd [#allocation4], 4294967280 }
 0x11c   :  { %101 = sfence }
 0x11d   :  { %102 = vsyncpa [#allocation3], 1 }
 0x11e   :  { %103 = vsyncpa [#allocation6], 1 }
 0x11f   :  { %104 = vsyncpa [#allocation4], 1 }

</bundles_post_ra>
